<compile_context>
chip_gen: v7x
topology: tpu7x:2x2x1
jax: 0.10.0
libtpu: 0.0.40
codegen_flags: <defaults>
</compile_context>

<pallas_src>
import functools

import jax
import jax.numpy as jnp
import numpy as np
from jax import lax
from jax.experimental import pallas as pl
from jax.experimental.pallas import tpu as pltpu


# --------------------------------------------------------------------------------------
# Generation-aware VMEM budgeting
# --------------------------------------------------------------------------------------
def _vmem_capacity_bytes():
    try:
        info = pltpu.get_tpu_info()
        return int(getattr(info, "vmem_capacity_bytes", 64 * 1024 * 1024))
    except Exception:
        return 64 * 1024 * 1024


@functools.lru_cache(maxsize=None)
def _vmem_budget():
    """Returns (target_block_bytes, scoped_vmem_limit_bytes)."""
    cap = _vmem_capacity_bytes()
    if cap >= 96 * 1024 * 1024:                      # v5e / v6e: 128 MiB physical VMEM
        return 12 * 1024 * 1024, 96 * 1024 * 1024
    return 6 * 1024 * 1024, 48 * 1024 * 1024         # v7x: 64 MiB physical VMEM


def _compiler_params():
    _, limit = _vmem_budget()
    return pltpu.CompilerParams(
        dimension_semantics=("parallel", "arbitrary"),
        vmem_limit_bytes=limit,
    )


def _pick_tile_bc(BC, row_bytes, target_bytes, align):
    """Rows per BC block: big enough to amortize the ~0.35us/step pipeline overhead,
    small enough for VMEM, and — when the whole input would fit in one block — split
    into >= 2 blocks so both v7x TensorCores get work (free on 1-TC chips)."""
    t = max(1, target_bytes // max(1, row_bytes))
    if t >= BC:
        if BC >= 2 * align:
            half = -(-BC // 2)
            t = ((half + align - 1) // align) * align
        else:
            t = BC
    else:
        t = max(align, (t // align) * align)
    return int(min(t, BC))


# --------------------------------------------------------------------------------------
# Path A: H*W % 128 == 0 -> flattened images, pure XLU lane rotations (mem-bound).
# --------------------------------------------------------------------------------------
def _flat_roll_kernel(sx_ref, sy_ref, x_ref, o_ref, *, H, W):
    t = pl.program_id(1)
    sx = sx_ref[t]                        # in [0, H)
    sy = sy_ref[t]                        # in [0, W)
    HW = H * W

    x = x_ref[...]                        # (tile_bc, HW); VMEM-resident across all t
    # Row roll: a flat circular shift of sx*W == rolling rows by sx (row boundaries
    # line up with the overall wrap, since 0 <= j < W).
    xr = pltpu.roll(x, sx * W, 1)
    # Column roll: out[i, j] = xr[i, (j - sy) mod W].  A flat roll by sy is correct for
    # lanes with j >= sy; for j < sy the source is W lanes further on, i.e. a flat roll
    # by sy - W, obtained from `a` with one extra STATIC roll of HW - W.
    a = pltpu.roll(xr, sy, 1)
    b = pltpu.roll(a, HW - W, 1)
    j_out = lax.broadcasted_iota(jnp.int32, (1, HW), 1) % W
    o_ref[0] = jnp.where(j_out >= sy, a, b).astype(o_ref.dtype)


def _shift_flat(x2d, sx, sy, n_trans, H, W):
    BC, HW = x2d.shape
    itemsize = x2d.dtype.itemsize
    target, _ = _vmem_budget()
    align = 16 if itemsize == 2 else 8    # keep the sublane block dim packing-aligned
    tile_bc = _pick_tile_bc(BC, HW * itemsize, target, align)
    kernel = functools.partial(_flat_roll_kernel, H=H, W=W)
    grid = (pl.cdiv(BC, tile_bc), n_trans)
    return pl.pallas_call(
        kernel,
        out_shape=jax.ShapeDtypeStruct((n_trans, BC, HW), x2d.dtype),
        grid_spec=pltpu.PrefetchScalarGridSpec(
            num_scalar_prefetch=2,
            grid=grid,
            in_specs=[pl.BlockSpec((tile_bc, HW), lambda j, t, sx_r, sy_r: (j, 0))],
            out_specs=pl.BlockSpec((1, tile_bc, HW), lambda j, t, sx_r, sy_r: (t, j, 0)),
        ),
        compiler_params=_compiler_params(),
    )(sx, sy, x2d)


# --------------------------------------------------------------------------------------
# Path B: generic fallback -> slab-batched separable permutation matmuls.
# --------------------------------------------------------------------------------------
def _pq_kernel(sx_ref, sy_ref, x_ref, o_ref, *, H, W, compute_dtype):
    t = pl.program_id(1)
    sx = sx_ref[t]
    sy = sy_ref[t]
    nimg = x_ref.shape[0]

    # Column permutation Q: (img @ Q)[i, j] = img[i, (j - sy) mod W].
    col_k = lax.broadcasted_iota(jnp.int32, (W, W), 0)
    col_j = lax.broadcasted_iota(jnp.int32, (W, W), 1)
    Q = (col_k == (col_j + (W - sy)) % W).astype(compute_dtype)
    # Row permutation P: (P @ img)[i, w] = img[(i - sx) mod H, w].
    row_i = lax.broadcasted_iota(jnp.int32, (H, H), 0)
    row_k = lax.broadcasted_iota(jnp.int32, (H, H), 1)
    P = ((row_i + (H - sx)) % H == row_k).astype(compute_dtype)

    # One-hot operands make the matmuls exact permutations (bf16 kept as bf16).
    x = x_ref[...].astype(compute_dtype)                       # (nimg, H, W)
    # Column roll: ONE 2D matmul with M = nimg*H (good MXU utilization).
    x1 = jnp.dot(x.reshape(nimg * H, W), Q,
                 preferred_element_type=jnp.float32).astype(compute_dtype)
    x1 = x1.reshape(nimg, H, W)
    # Row roll: slab-batched matmul (P broadcast along the image axis), output comes
    # out directly in (b, h, w) order -> no transposes.
    P_b = jnp.broadcast_to(P, (nimg, H, H))
    out = jnp.einsum("bhk,bkw->bhw", P_b, x1, preferred_element_type=jnp.float32)
    o_ref[0] = out.astype(o_ref.dtype)                          # single whole-slab store


def _shift_pq(x3d, sx, sy, n_trans, H, W):
    BC, _, _ = x3d.shape
    itemsize = x3d.dtype.itemsize
    target, _ = _vmem_budget()
    # This path holds extra intermediates (x1, broadcast P, out) -> smaller slab target.
    tile_bc = _pick_tile_bc(BC, H * W * itemsize, max(1, target // 2), 8)
    # TODO(synk): integer inputs with |value| > 2^24 lose exactness through the f32
    # permutation matmuls; route such cases through a DMA-based scatter instead.
    compute_dtype = x3d.dtype if jnp.issubdtype(x3d.dtype, jnp.floating) else jnp.float32
    kernel = functools.partial(_pq_kernel, H=H, W=W, compute_dtype=compute_dtype)
    grid = (pl.cdiv(BC, tile_bc), n_trans)
    return pl.pallas_call(
        kernel,
        out_shape=jax.ShapeDtypeStruct((n_trans, BC, H, W), x3d.dtype),
        grid_spec=pltpu.PrefetchScalarGridSpec(
            num_scalar_prefetch=2,
            grid=grid,
            in_specs=[pl.BlockSpec((tile_bc, H, W), lambda j, t, sx_r, sy_r: (j, 0, 0))],
            out_specs=pl.BlockSpec((1, tile_bc, H, W),
                                   lambda j, t, sx_r, sy_r: (t, j, 0, 0)),
        ),
        compiler_params=_compiler_params(),
    )(sx, sy, x3d)


# --------------------------------------------------------------------------------------
# Public wrappers
# --------------------------------------------------------------------------------------
def shift_pallas(x, x_shift, y_shift):
    """x: (B, C, H, W); x_shift, y_shift: (n_trans,) ints. Returns (n_trans*B, C, H, W)."""
    B, C, H, W = x.shape
    n_trans = int(x_shift.shape[0])
    BC = B * C
    # Normalize shifts to [0, H) / [0, W) so all in-kernel arithmetic is non-negative.
    sx = jnp.mod(x_shift.astype(jnp.int32), H).astype(jnp.int32)
    sy = jnp.mod(y_shift.astype(jnp.int32), W).astype(jnp.int32)

    if (H * W) % 128 == 0 and x.dtype.itemsize in (2, 4):
        out = _shift_flat(x.reshape(BC, H * W), sx, sy, n_trans, H, W)   # (nT, BC, HW)
    else:
        out = _shift_pq(x.reshape(BC, H, W), sx, sy, n_trans, H, W)      # (nT, BC, H, W)
    return out.reshape(n_trans * B, C, H, W)


def shift_forward(x, key, n_trans=1, shift_max=1.0):
    """Replicates Shift.forward: draws random integer (sx, sy) shifts without
    replacement from [-H_max, H_max) / [-W_max, W_max) and applies circular rolls."""
    H, W = x.shape[-2], x.shape[-1]
    assert n_trans <= H - 1 and n_trans <= W - 1
    H_max, W_max = int(shift_max * H), int(shift_max * W)
    # torch zips the two shift lists, so the effective count is capped by availability.
    n_eff = n_trans
    if H_max > 0:
        n_eff = min(n_eff, 2 * H_max)
    if W_max > 0:
        n_eff = min(n_eff, 2 * W_max)
    kx, ky = jax.random.split(key)
    if H_max > 0:
        x_shift = jax.random.permutation(kx, jnp.arange(-H_max, H_max))[:n_eff]
    else:
        x_shift = jnp.zeros((n_eff,), jnp.int32)
    if W_max > 0:
        y_shift = jax.random.permutation(ky, jnp.arange(-W_max, W_max))[:n_eff]
    else:
        y_shift = jnp.zeros((n_eff,), jnp.int32)
    out = shift_pallas(x, x_shift.astype(jnp.int32), y_shift.astype(jnp.int32))
    return out, x_shift, y_shift


if __name__ == "__main__":
    key = jax.random.PRNGKey(0)
    k_data, k_shift, k_data2, k_shift2 = jax.random.split(key, 4)

    # Test 1: flat lane-roll path (16x16 -> HW = 256, multiple of 128).
    B, C, H, W = 2, 4, 16, 16
    n_trans = 3
    x = jax.random.normal(k_data, (B, C, H, W), dtype=jnp.float32)
    out, xs, ys = shift_forward(x, k_shift, n_trans=n_trans, shift_max=1.0)
    out = jax.block_until_ready(out)
    ref = jnp.concatenate(
        [jnp.roll(x, (int(a), int(b)), axis=(-2, -1))
         for a, b in zip(np.asarray(xs), np.asarray(ys))],
        axis=0,
    )
    assert out.shape == (n_trans * B, C, H, W), out.shape
    np.testing.assert_allclose(np.asarray(out), np.asarray(ref), rtol=1e-6, atol=1e-6)

    # Test 2: generic fallback path (batched P/Q permutation matmuls), 40x40 images.
    B2, C2, H2, W2 = 1, 2, 40, 40
    n_trans2 = 2
    x2 = jax.random.normal(k_data2, (B2, C2, H2, W2), dtype=jnp.float32)
    out2, xs2, ys2 = shift_forward(x2, k_shift2, n_trans=n_trans2, shift_max=1.0)
    out2 = jax.block_until_ready(out2)
    ref2 = jnp.concatenate(
        [jnp.roll(x2, (int(a), int(b)), axis=(-2, -1))
         for a, b in zip(np.asarray(xs2), np.asarray(ys2))],
        axis=0,
    )
    assert out2.shape == (n_trans2 * B2, C2, H2, W2), out2.shape
    np.testing.assert_allclose(np.asarray(out2), np.asarray(ref2), rtol=1e-6, atol=1e-6)

    print("KERNEL_OK")
</pallas_src>

<mosaic_0001>
module attributes {stable_mosaic.version = 11 : i64} {
  func.func @_flat_roll_kernel(%arg0: i32, %arg1: i32, %arg2: memref<3xi32, #tpu.memory_space<smem>>, %arg3: memref<3xi32, #tpu.memory_space<smem>>, %arg4: memref<8x256xf32, #tpu.memory_space<vmem>>, %arg5: memref<1x8x256xf32, #tpu.memory_space<vmem>>) attributes {dimension_semantics = [#tpu.dimension_semantics<parallel>, #tpu.dimension_semantics<arbitrary>], iteration_bounds = array<i64: 1, 3>, scalar_prefetch = 2 : i64, scratch_operands = 0 : i64, tpu.core_type = #tpu.core_type<tc>, window_params = [{transform_indices = @transform_0, window_bounds = array<i64: 8, 256>}, {transform_indices = @transform_1, window_bounds = array<i64: 1, 8, 256>}]} {
    %0 = arith.index_cast %arg1 : i32 to index
    %1 = memref.load %arg2[%0] : memref<3xi32, #tpu.memory_space<smem>>
    %2 = arith.index_cast %arg1 : i32 to index
    %3 = memref.load %arg3[%2] : memref<3xi32, #tpu.memory_space<smem>>
    %c0 = arith.constant 0 : index
    %c0_0 = arith.constant 0 : index
    %4 = vector.load %arg4[%c0, %c0_0] : memref<8x256xf32, #tpu.memory_space<vmem>>, vector<8x256xf32>
    %c16_i32 = arith.constant 16 : i32
    %5 = arith.muli %1, %c16_i32 : i32
    %6 = tpu.dynamic_rotate %4 by %5 dim 1 : vector<8x256xf32>, i32 -> vector<8x256xf32>
    %7 = tpu.dynamic_rotate %6 by %3 dim 1 : vector<8x256xf32>, i32 -> vector<8x256xf32>
    %c240_i32 = arith.constant 240 : i32
    %8 = tpu.dynamic_rotate %7 by %c240_i32 dim 1 : vector<8x256xf32>, i32 -> vector<8x256xf32>
    %9 = tpu.iota {dimensions = array<i32: 1>} : vector<1x256xi32>
    %c16_i32_1 = arith.constant 16 : i32
    %c0_i32 = arith.constant 0 : i32
    %10 = arith.cmpi eq, %c16_i32_1, %c0_i32 : i32
    %c1_i32 = arith.constant 1 : i32
    %11 = arith.select %10, %c1_i32, %c16_i32_1 : i32
    %12 = vector.broadcast %11 : i32 to vector<1x256xi32>
    %13 = arith.remsi %9, %12 : vector<1x256xi32>
    %c0_i32_2 = arith.constant 0 : i32
    %14 = vector.broadcast %c0_i32_2 : i32 to vector<1x256xi32>
    %15 = arith.cmpi ne, %13, %14 : vector<1x256xi32>
    %c0_i32_3 = arith.constant 0 : i32
    %16 = vector.broadcast %c0_i32_3 : i32 to vector<1x256xi32>
    %17 = arith.cmpi slt, %13, %16 : vector<1x256xi32>
    %c0_i32_4 = arith.constant 0 : i32
    %18 = arith.cmpi slt, %11, %c0_i32_4 : i32
    %19 = vector.broadcast %18 : i1 to vector<1x256xi1>
    %20 = vector.broadcast %19 : vector<1x256xi1> to vector<1x256xi1>
    %21 = arith.xori %17, %20 : vector<1x256xi1>
    %22 = arith.andi %21, %15 : vector<1x256xi1>
    %23 = vector.broadcast %11 : i32 to vector<1x256xi32>
    %24 = arith.addi %13, %23 : vector<1x256xi32>
    %25 = arith.select %22, %24, %13 : vector<1x256xi1>, vector<1x256xi32>
    %26 = vector.broadcast %3 : i32 to vector<1x256xi32>
    %27 = arith.cmpi sge, %25, %26 : vector<1x256xi32>
    %28 = vector.shape_cast %27 : vector<1x256xi1> to vector<1x256xi1>
    %29 = vector.broadcast %28 : vector<1x256xi1> to vector<8x256xi1>
    %30 = arith.select %29, %7, %8 : vector<8x256xi1>, vector<8x256xf32>
    %c0_5 = arith.constant 0 : index
    %c0_6 = arith.constant 0 : index
    %c0_7 = arith.constant 0 : index
    %31 = vector.load %arg5[%c0_5, %c0_6, %c0_7] : memref<1x8x256xf32, #tpu.memory_space<vmem>>, vector<1x8x256xf32>
    %32 = vector.shape_cast %31 : vector<1x8x256xf32> to vector<8x256xf32>
    %33 = vector.shape_cast %30 : vector<8x256xf32> to vector<1x8x256xf32>
    tpu.vector_store %arg5[%c0_5, %c0_6, %c0_7], %33 {strides = array<i32>} : memref<1x8x256xf32, #tpu.memory_space<vmem>>, vector<1x8x256xf32>,
    return
  }
  func.func @transform_0(%arg0: i32, %arg1: i32, %arg2: memref<3xi32, #tpu.memory_space<smem>>, %arg3: memref<3xi32, #tpu.memory_space<smem>>) -> (i32, i32) {
    %c0_i32 = arith.constant 0 : i32
    %c0_i32_0 = arith.constant 0 : i32
    return %arg0, %c0_i32 : i32, i32
  }
  func.func @transform_1(%arg0: i32, %arg1: i32, %arg2: memref<3xi32, #tpu.memory_space<smem>>, %arg3: memref<3xi32, #tpu.memory_space<smem>>) -> (i32, i32, i32) {
    %c0_i32 = arith.constant 0 : i32
    %c0_i32_0 = arith.constant 0 : i32
    return %arg1, %arg0, %c0_i32 : i32, i32, i32
  }
}

</mosaic_0001>

<bundles_post_ra>
// kernel: tpu_custom_call.1
= control target key start
LH: loop header
LB: loop body
LE: loop exit
PB: predicated region body
PF: predicated region fallthrough
CT: control target
= control target key end

     0   :  { %s721_s0 = inlined_call_operand.hbm [shape: s32[3], index: 0, kind: input, shape index: {}]   ;;  %s722_s2 = inlined_call_operand.hbm [shape: f32[8,256], index: 2, kind: input, shape index: {}]   ;;  %s723_s3 = inlined_call_operand.hbm [shape: f32[3,8,256], index: 3, kind: output, shape index: {}]   ;;  %s724_s1 = inlined_call_operand.vmem [shape: s32[3], index: 1, kind: input, shape index: {}]  }
   0x1   :  { %s394_s14 = scalar_lea.hbm %s721_s0, 16 }
   0x2   :  { %p395_p0 = scmp.ne.s32.totalorder %s721_s0, %s394_s14  ;;  %p398_p1 = scmp.lt.u32.totalorder %s394_s14, %s721_s0 }
   0x4   :  { %p400_p2 = pnand %p398_p1, %p395_p0 }
   0x6   :  { %403 = shalt.err (!%p400_p2)  }
   0x7   :  { %s530_s19 = smov [#allocation3]   ;;  %s10_s24 = sshll.u32 %s724_s1, 4  ;;  %s11_s24 = int_to_ptr.vmem [resolvable:$true] %s10_s24 }
   0x8   :  { %9 = dma.hbm_to_smem %s721_s0, 16, %s530_s19, [#allocation2] }
   0x9   :  { %s404_s25 = scalar_lea.vmem %s11_s24, 16  ;;  %p409_p4 = scmp.lt.s32.totalorder %s11_s24, %s11_s24 }
   0xa   :  { %p405_p3 = scmp.ne.s32.totalorder %s11_s24, %s404_s25  ;;  %p410_p5 = scmp.lt.s32.totalorder %s404_s25, %s404_s25 }
   0xc   :  { %p411_p6 = por %p410_p5, %p409_p4 }
   0xe   :  { %p412_p7 = pnand %p411_p6, %p405_p3 }
  0x10   :  { %415 = shalt.err (!%p412_p7)  }
  0x11   :  { %s531_s26 = smov [#allocation4]  }
  0x12   :  { %13 = dma.vmem_to_smem %s11_s24, 16, %s531_s26, [#allocation2] }
  0x13   :  { %496 = dma.done.wait [#allocation2], 32 }
  0x14   :  { %497 = vsyncadd [#allocation2], 4294967264 }
  0x15   :  { %15 = sfence }
  0x16   :  { %16 = vsyncpa [#allocation6], 0 }
  0x17   :  { %17 = vsyncpa [#allocation7], 0 }
  0x18   :  { %19 = vsyncpa [#allocation7 + $0x1], 0  ;;  %s570_s0 = smov 0   ;;  %s572_s27 = smov 0  }
  0x19   :  { %s574_s1 = smov 0   ;;  %s576_s28 = smov 0  }
  0x1a   :  { %s578_s29 = smov 0   ;;  %s580_s30 = smov 0  }
  0x1b LB: > { %s311_s4 = sadd.s32 4294967295, %s528_s30   ;;  %s312_s5 = sadd.s32 4294967294, %s528_s30   ;;  %s528_s30 = sphi %s580_s30, %s25_s30   ;;  %s524_s29 = sphi %s578_s29, %s742_s29   ;;  %s520_s28 = sphi %s576_s28, %s741_s28   ;;  %s516_s1 = sphi %s574_s1, %s740_s1   ;;  %s512_s27 = sphi %s572_s27, %s739_s27   ;;  %s508_s0 = sphi %s570_s0, %s738_s0  }
  0x1c   : > { %s34_s6 = sadd.s32 1, %s524_s29  ;;  %s72_s7 = sadd.s32 1, %s516_s1 }
  0x1d   : > { %p35_p8 = scmp.ge.s32.totalorder %s34_s6, 3  ;;  %p82_p9 = scmp.ne.s32.totalorder %s516_s1, %s512_s27 }
  0x1e   : > { %p83_p10 = scmp.eq.s32.totalorder %s311_s4, 2  ;;  %p88_p11 = scmp.ne.s32.totalorder %s512_s27, %s508_s0 }
  0x1f   : > { %s744_s6 = smov (%p35_p8, %s34_s6), 0  ;;  %p89_p13 = scmp.eq.s32.totalorder %s312_s5, 2 }
  0x20   : > { %p610_p12 = por %p83_p10, %p82_p9  ;;  %s67_s9 = ssub.s32 %s524_s29, %s744_s6 }
  0x21   : > { %p313_p0 = scmp.ge.s32.totalorder %s528_s30, 1  ;;  %p70_p1 = scmp.eq.s32.totalorder %s67_s9, 0 }
  0x22   : > { %s729_s8 = scalar_select %p610_p12, 1, 0 }
  0x23   : > { %p617_p2 = por %p89_p13, %p88_p11  ;;  %p96_p3 = scmp.lt.s32.totalorder %s528_s30, 4 }
  0x24   : > { %s623_s11 = scalar_select %p70_p1, %s516_s1, %s72_s7  }
  0x25   : > { %s730_s10 = scalar_select %p617_p2, 1, 0 }
  0x26   : > { %p625_p4 = pnand %p313_p0, %p96_p3  ;;  %p629_p5 = scmp.eq.s32.totalorder %s311_s4, 0 }
  0x27   : > { %s532_s14 = smov [#allocation5]   ;;  %s416_s19 = scalar_lea.hbm %s722_s2, 256 }
  0x28   : > { %s731_s12 = scalar_select %p625_p4, 1, 0 }
  0x29   : > { %s732_s13 = scalar_select %p629_p5, 1, 0 }
  0x2a   : > { %p331_p6 = pneg %p625_p4  ;;  %s112_s15 = sshll.u32 %s532_s14, 4  ;;  %s113_s15 = int_to_ptr.vmem [resolvable:$true] %s112_s15 }
  0x2b   : > { %p417_p8 = scmp.ne.s32.totalorder %s722_s2, %s416_s19  ;;  %p423_p13 = scmp.lt.u32.totalorder %s416_s19, %s722_s2 }
  0x2c   : > { %p637_p7 = pnand %p629_p5, %p331_p6 }
  0x2e   : > { %p418_p9 = pneg %p637_p7 }
  0x30   : > { %p419_p10 = pnand %p418_p9, %p417_p8 }
  0x32   : > { %p420_p11 = pneg %p419_p10 }
  0x34   : > { %p425_p0 = pnand %p423_p13, %p420_p11 }
  0x36   : > { %428 = shalt.err (!%p425_p0)
}
  0x37   : > { %s429_s24 = scalar_lea.vmem %s113_s15, 256  ;;  %p437_p2 = scmp.lt.s32.totalorder %s113_s15, %s113_s15 }
  0x38   : > { %p430_p1 = scmp.ne.s32.totalorder %s113_s15, %s429_s24  ;;  %p438_p12 = scmp.lt.s32.totalorder %s429_s24, %s429_s24 }
  0x3a   : > { %p432_p3 = pnand %p430_p1, %p418_p9  ;;  %p439_p5 = por %p438_p12, %p437_p2 }
  0x3c   : > { %p433_p6 = pneg %p432_p3 }
  0x3e   : > { %p440_p4 = pnand %p439_p5, %p433_p6 }
  0x40   : > { %443 = shalt.err (!%p440_p4)
}
  0x41   : > { %334 = dma.hbm_to_vmem [thread:$0]  (!%p637_p7), %s722_s2, 256, %s113_s15, [#allocation6]  }
  0x42   : > { %p734_p8 = scmp.ne.s32.totalorder %s731_s12, 0 }
  0x43   : > { %p735_p10 = scmp.ne.s32.totalorder (!%p734_p8), %s732_s13, 0 }
  0x44   : > { %125 = sbr.rel (%p734_p8) target bundleno = 458 (0x1ca), region = 24 }
  0x4b   : > { %499 = dma.done.wait (%p735_p10), [#allocation6], 256  }
  0x4c   : > { %501 = vsyncadd (%p735_p10), [#allocation6], 4294967040  ;;  %s140_s4 = sld [smem:[#allocation3 + %s520_s28]]  ;;  %v142_v0 = vld [vmem:[#allocation5] sm:$0xff]  ;;  %v143_v1 = vld [vmem:[#allocation5 + $0x8] sm:$0xff]  ;;  %v153_v2 = vlaneseq  ;;  %s533_s19 = smov 112  }
  0x4d   : > { %s665_s14 = sld [smem:[#allocation4 + %s520_s28]]  ;;  %s137_s20 = sand.u32 1, %s512_s27  }
  0x4e   : > { %v154_v3 = vand.u32 127, %v153_v2  ;;  %s317_s21 = sshll.u32 %s137_s20, 4  ;;  %s324_s22 = sshll.u32 %s520_s28, 8 }
  0x4f   : > { %s139_s23 = scalar_lea.vmem [#allocation8], %s317_s21  ;;  %s223_s28 = scalar_lea.sflag [#allocation7], %s137_s20 }
  0x50   : > { %v186_v20 = vadd.s32 128, %v154_v3  ;;  %v191_v21 = vand.u32 15, %v154_v3  ;;  %vm183_vm4 = vcmp.lt.s32.totalorder %v154_v3, 112  ;;  %s239_s24 = sshll.u32 %s139_s23, 4  ;;  %p736_p2 = scmp.ne.s32.totalorder %s729_s8, 0  ;;  %s676_s24 = int_to_ptr.vmem [resolvable:$true] %s239_s24 }
  0x52   : > { %s318_s5 = sshll.u32 %s140_s4, 4  ;;  %v198_v22 = vand.u32 15, %v186_v20  ;;  %s674_s4 = scalar_lea.hbm %s723_s3, %s324_s22 }
  0x53   : > { %s145_s7 = sand.u32 255, %s318_s5   ;;  %s163_s13 = sand.u32 255, %s665_s14   ;;  %v211_v23 = vstv %s665_s14 }
  0x54   : > { %s146_s9 = sand.u32 127, %s145_s7   ;;  %s147_s12 = sshrl.u32 %s145_s7, 7  ;;  %vm212_vm5 = vcmp.ge.s32.totalorder %v191_v21, %v211_v23  ;;  %vm213_vm6 = vcmp.ge.s32.totalorder %v198_v22, %v211_v23 }
  0x55   : > { %148 = vrot.lane.b32.xlu0 %v142_v0, %s146_s9  ;;  %s158_s15 = sand.u32 1, %s147_s12  ;;  %v152_v4 = vstv %s146_s9  ;;  %s164_s16 = sand.u32 127, %s163_s13  }
  0x56   : > { %v159_v6 = vstv %s158_s15  ;;  %vm155_vm0 = vcmp.lt.s32.totalorder %v154_v3, %v152_v4  ;;  %s165_s17 = sshrl.u32 %s163_s13, 7  ;;  %v170_v12 = vstv %s164_s16  ;;  %s444_s5 = scalar_lea.vmem %s676_s24, 256 }
  0x57   : > { %vm160_vm1 = vcmp.ne.s32.totalorder %v159_v6, 0  ;;  %s174_s18 = sand.u32 1, %s165_s17  ;;  %vm171_vm2 = vcmp.lt.s32.totalorder %v154_v3, %v170_v12  ;;  %p445_p12 = scmp.ne.s32.totalorder %s676_s24, %s444_s5 }
  0x58   : > { %v175_v14 = vstv %s174_s18  ;;  %s534_s7 = smov [#allocation8]  }
  0x59   : > { %150 = vrot.lane.b32.xlu0 %v143_v1, %s146_s9  ;;  %vm176_vm3 = vcmp.ne.s32.totalorder %v175_v14, 0  ;;  %p446_p4 = pnand %p445_p12, %p736_p2  ;;  %s448_s9 = sshll.u32 %s534_s7, 4  ;;  %s449_s9 = int_to_ptr.vmem [resolvable:$false] %s448_s9 }
  0x5a   : > { %s450_s14 = scalar_lea.vmem %s449_s9, 512  ;;  %p451_p7 = scmp.lt.s32.totalorder %s676_s24, %s449_s9 }
  0x5b   : > { %p447_p5 = pneg %p446_p4  ;;  %p452_p9 = scmp.lt.s32.totalorder %s450_s14, %s444_s5 }
  0x5d   : > { %p453_p11 = por %p452_p9, %p451_p7 }
  0x5f   : > { %p454_p13 = pnand %p453_p11, %p447_p5 }
  0xc7   : > { %v149_v5 = vpop.permute.xlu0 %148 }
  0xcb   : > { %v151_v7 = vpop.permute.xlu0 %150 }
  0xcc   : > { %v156_v8 = vsel %vm155_vm0, %v149_v5, %v151_v7  ;;  %v157_v9 = vsel %vm155_vm0, %v151_v7, %v149_v5 }
  0xcd   : > { %v161_v10 = vsel %vm160_vm1, %v156_v8, %v157_v9  ;;  %v162_v11 = vsel %vm160_vm1, %v157_v9, %v156_v8 }
  0xce   : > { %166 = vrot.lane.b32.xlu1 %v161_v10, %s164_s16 }
  0xd2   : > { %168 = vrot.lane.b32.xlu1 %v162_v11, %s164_s16 }
 0x140   : > { %v167_v13 = vpop.permute.xlu1 %166 }
 0x144   : > { %v169_v15 = vpop.permute.xlu1 %168 }
 0x145   : > { %v172_v16 = vsel %vm171_vm2, %v167_v13, %v169_v15  ;;  %v173_v17 = vsel %vm171_vm2, %v169_v15, %v167_v13 }
 0x146   : > { %v178_v18 = vsel %vm176_vm3, %v173_v17, %v172_v16  ;;  %v177_v19 = vsel %vm176_vm3, %v172_v16, %v173_v17 }
 0x147   : > { %181 = vrot.lane.b32.xlu1 %v178_v18, %s533_s19  ;;  %179 = vrot.lane.b32.xlu0 %v177_v19, %s533_s19 }
 0x1b9   : > { %v182_v24 = vpop.permute.xlu1 %181  ;;  %v180_v25 = vpop.permute.xlu0 %179 }
 0x1ba   : > { %v184_v26 = vsel %vm183_vm4, %v180_v25, %v182_v24  ;;  %v185_v27 = vsel %vm183_vm4, %v182_v24, %v180_v25 }
 0x1bb   : > { %v218_v28 = vsel %vm212_vm5, %v177_v19, %v184_v26  ;;  %v219_v29 = vsel %vm213_vm6, %v178_v18, %v185_v27 }
 0x1bc   : > { %220 = vst [vmem:[%s139_s23] sm:$0xff] %v218_v28  ;;  %221 = vst [vmem:[%s139_s23 + $0x8] sm:$0xff] %v219_v29 }
 0x1bd   : > { %457 = shalt.err (!%p454_p13)
}
 0x1be   : > { %s458_s12 = scalar_lea.hbm %s674_s4, 256  ;;  %s462_s16 = scalar_lea.hbm %s723_s3, 768 }
 0x1bf   : > { %p459_p0 = scmp.ne.s32.totalorder %s674_s4, %s458_s12  ;;  %p463_p6 = scmp.lt.u32.totalorder %s674_s4, %s723_s3 }
 0x1c0   : > { %p464_p8 = scmp.lt.u32.totalorder %s462_s16, %s458_s12  ;;  %p466_p12 = scmp.lt.u32.totalorder %s458_s12, %s674_s4 }
 0x1c1   : > { %p460_p1 = pnand %p459_p0, %p736_p2 }
 0x1c2   : > { %p465_p10 = por %p464_p8, %p463_p6 }
 0x1c3   : > { %p461_p3 = pneg %p460_p1 }
 0x1c4   : > { %p467_p4 = por %p466_p12, %p465_p10 }
 0x1c6   : > { %p468_p5 = pnand %p467_p4, %p461_p3 }
 0x1c8   : > { %471 = shalt.err (!%p468_p5)
}
 0x1c9   : > { %329 = dma.vmem_to_hbm [thread:$0]  (%p736_p2), %s676_s24, 256, %s674_s4, %s223_s28  }
 0x1ca PF: > { %p341_p7 = scmp.ge.s32.totalorder %s528_s30, 2  ;;  %s251_s19 = sand.u32 1, %s508_s0  }
 0x1cb   : > { %p737_p9 = scmp.ne.s32.totalorder %s730_s10, 0  ;;  %s252_s20 = scalar_lea.sflag [#allocation7], %s251_s19 }
 0x1cd   : > { %p336_p11 = pnand %p341_p7, %p737_p9 }
 0x1cf   : > { %503 = dma.done.wait (!%p336_p11), %s252_s20, 256  }
 0x1d0   : > { %505 = vsyncadd (!%p336_p11), %s252_s20, 4294967040  ;;  %s25_s30 = sadd.s32 1, %s528_s30   ;;  %s738_s0 = smov %s512_s27 }
 0x1d1   : > { %p22_p13 = scmp.ge.s32.totalorder %s25_s30, 5   ;;  %s739_s27 = smov %s516_s1 }
 0x1d2   : > { %s740_s1 = smov %s623_s11  ;;  %s741_s28 = smov %s524_s29 }
 0x1d3   : > { %s742_s29 = smov %s744_s6  ;;  %24 = sbr.rel (!%p22_p13) target bundleno = 27 (0x1b), region = 62 }
 0x1da   :  { %257 = vsyncpa [#allocation6], 1 }
 0x1db   :  { %259 = vsyncpa [#allocation6 + $0x1], 1 }
 0x1dc   :  { %260 = vsyncpa [#allocation7], 1 }
 0x1dd   :  { %262 = vsyncpa [#allocation7 + $0x1], 1 }

</bundles_post_ra>
